<compile_context>
chip_gen: v7x
topology: tpu7x:2x2x1
jax: 0.10.0
libtpu: 0.0.40
codegen_flags: <defaults>
</compile_context>

<pallas_src>
import functools

import jax
import jax.numpy as jnp
from jax import lax
from jax.experimental import pallas as pl
from jax.experimental.pallas import tpu as pltpu


def _softplus_pair(v):
    """(softplus(v), softplus(-v)) sharing the exp/log1p transcendentals."""
    sp_shared = jnp.log1p(jnp.exp(-jnp.abs(v)))  # one exp + one log1p per elem
    return jnp.maximum(v, 0.0) + sp_shared, jnp.maximum(-v, 0.0) + sp_shared


def mingru_model_kernel(x_ref, whg_ref, wfc_ref, bfc_ref, o_ref, *, seq_len):
    # x_ref:   (bb*T, E)  bb sequences' embeddings, time-major within each seq
    # whg_ref: (E, 2E)    fused to_hidden_and_gate weight ([W_h | W_g])
    # wfc_ref: (1, E)     fc weight row
    # bfc_ref: (1, 1)     fc bias
    # o_ref:   (bb, 1)    logits for this batch block
    T = seq_len
    rows, E = x_ref.shape
    bb = rows // T

    x = x_ref[...]  # (rows, E)

    # --- fused to_hidden_and_gate: one (rows,E)@(E,2E) MXU matmul -------------
    hg = jnp.dot(x, whg_ref[...], preferred_element_type=jnp.float32)  # (rows, 2E)
    hidden = hg[:, :E]
    gate = hg[:, E:]

    # --- log-space minGRU gate math (shared transcendentals) -----------------
    sp_g, sp_ng = _softplus_pair(gate)          # softplus(gate), softplus(-gate)
    log_coeffs = -sp_g
    log_z = -sp_ng
    sp_nh = jnp.maximum(-hidden, 0.0) + jnp.log1p(jnp.exp(-jnp.abs(hidden)))
    log_tilde_h = jnp.where(
        hidden >= 0.0,
        jnp.log(jnp.maximum(hidden, 0.0) + 0.5),
        -sp_nh,
    )
    log_values = log_z + log_tilde_h            # (rows, E)

    # --- per-sequence inclusive cumsum over time: log2(T) shift-add scan -----
    # Rows are grouped [b*T, (b+1)*T). Masking on the within-sequence time
    # index keeps the scan confined to each sequence, so the circular roll
    # never leaks data across batch elements.
    t_idx = lax.broadcasted_iota(jnp.int32, (bb, T, E), 1).reshape(rows, E)
    a_star = log_coeffs
    d = 1
    while d < T:
        rolled = pltpu.roll(a_star, shift=d, axis=0)
        a_star = a_star + jnp.where(t_idx >= d, rolled, 0.0)
        d *= 2

    # --- only the last timestep of the Heinsen scan is consumed --------------
    #   h_T = exp(a_star_T + logsumexp_t(log_values_t - a_star_t))
    diff3 = (log_values - a_star).reshape(bb, T, E)
    a3 = a_star.reshape(bb, T, E)
    m = jnp.max(diff3, axis=1, keepdims=True)                       # (bb, 1, E)
    s = jnp.sum(jnp.exp(diff3 - m), axis=1, keepdims=True)          # (bb, 1, E)
    a_last = a3[:, T - 1:, :]                                       # (bb, 1, E)
    h_last = (jnp.exp(a_last + m) * s).reshape(bb, E)               # (bb, E)

    # dropout(p=0.3) is identity in eval / inference mode.

    # --- fc (out_features=1): VPU multiply + lane reduce, no N=1 MXU push ----
    logits = jnp.sum(h_last * wfc_ref[...], axis=-1, keepdims=True)  # (bb, 1)
    o_ref[...] = (logits + bfc_ref[...]).astype(o_ref.dtype)


def mingru_model_forward(token_ids, emb_table, w_hg, w_fc, b_fc, *, batch_block=None):
    """token_ids: (B, T) int32. Returns logits (B, 1) float32.

    batch_block defaults to B (single grid step: whole batch folded into the
    matmul M dimension). For very large B on multi-core parts, pick a
    batch_block with batch_block % 8 == 0 so the grid's parallel axis shards
    across TensorCores while keeping block shapes (8,128)-legal.
    """
    B, T = token_ids.shape
    E = emb_table.shape[1]
    if batch_block is None:
        batch_block = B
    assert B % batch_block == 0
    num_blocks = B // batch_block

    # Glue: embedding gather in plain JAX; flatten (B,T,E) -> (B*T, E) so the
    # whole batch feeds one MXU matmul (the reshape is free outside the kernel).
    x2d = emb_table[token_ids].reshape(B * T, E).astype(jnp.float32)

    w_fc_row = w_fc.reshape(1, E)
    b_fc2d = b_fc.reshape(1, 1)

    kernel = functools.partial(mingru_model_kernel, seq_len=T)

    grid_spec = pltpu.PrefetchScalarGridSpec(
        num_scalar_prefetch=0,
        grid=(num_blocks,),
        in_specs=[
            pl.BlockSpec((batch_block * T, E), lambda i: (i, 0)),
            pl.BlockSpec((E, 2 * E), lambda i: (0, 0)),
            pl.BlockSpec((1, E), lambda i: (0, 0)),
            pl.BlockSpec((1, 1), lambda i: (0, 0)),
        ],
        out_specs=pl.BlockSpec((batch_block, 1), lambda i: (i, 0)),
    )

    return pl.pallas_call(
        kernel,
        out_shape=jax.ShapeDtypeStruct((B, 1), jnp.float32),
        grid_spec=grid_spec,
        compiler_params=pltpu.CompilerParams(
            dimension_semantics=("parallel",)
        ),
    )(x2d, w_hg, w_fc_row, b_fc2d)


def _reference_forward(token_ids, emb_table, w_hg, w_fc, b_fc):
    """Pure-JAX reference of the same math (trustworthy oracle)."""
    E = emb_table.shape[1]
    x = emb_table[token_ids]                          # (B, T, E)
    hg = jnp.einsum("bte,ef->btf", x, w_hg)           # (B, T, 2E)
    hidden, gate = hg[..., :E], hg[..., E:]
    log_coeffs = -jax.nn.softplus(gate)
    log_z = -jax.nn.softplus(-gate)
    log_tilde_h = jnp.where(hidden >= 0,
                            jnp.log(jnp.maximum(hidden, 0.0) + 0.5),
                            -jax.nn.softplus(-hidden))
    log_values = log_z + log_tilde_h
    a_star = jnp.cumsum(log_coeffs, axis=1)
    diff = log_values - a_star
    m = jnp.max(diff, axis=1, keepdims=True)
    lse = m + jnp.log(jnp.sum(jnp.exp(diff - m), axis=1, keepdims=True))
    h_last = jnp.exp(a_star[:, -1:, :] + lse)[:, 0, :]  # (B, E)
    return h_last @ w_fc + b_fc.reshape(1, 1)


if __name__ == "__main__":
    # Small shapes consistent with the module.
    VOCAB = 64
    E = 32          # embedding_dim == minGRU dim (hidden_size unused by forward)
    B, T = 2, 8

    key = jax.random.PRNGKey(0)
    k_tok, k_emb, k_wh, k_wg, k_fc, k_bfc = jax.random.split(key, 6)

    token_ids = jax.random.randint(k_tok, (B, T), 0, VOCAB, dtype=jnp.int32)

    # Deterministic synthetic parameters (shapes per the module's __init__):
    #   embedding: (VOCAB, E)
    #   minGRU to_hidden_and_gate: Linear(E, 2E, bias=False) -> fused (E, 2E)
    #   fc: Linear(E, 1) with bias
    emb_table = jax.random.normal(k_emb, (VOCAB, E), dtype=jnp.float32) * 0.1
    w_h = jax.random.normal(k_wh, (E, E), dtype=jnp.float32) * (1.0 / jnp.sqrt(E))
    w_g = jax.random.normal(k_wg, (E, E), dtype=jnp.float32) * (1.0 / jnp.sqrt(E))
    w_hg = jnp.concatenate([w_h, w_g], axis=1)   # fused to_hidden_and_gate weight
    w_fc = jax.random.normal(k_fc, (E, 1), dtype=jnp.float32) * (1.0 / jnp.sqrt(E))
    b_fc = jax.random.normal(k_bfc, (1,), dtype=jnp.float32) * 0.01

    out = mingru_model_forward(token_ids, emb_table, w_hg, w_fc, b_fc)
    out = jax.block_until_ready(out)

    ref = _reference_forward(token_ids, emb_table, w_hg, w_fc, b_fc)
    assert out.shape == (B, 1)
    assert jnp.allclose(out, ref, rtol=1e-3, atol=1e-3)

    print("KERNEL_OK")
</pallas_src>

<mosaic_0001>
module attributes {stable_mosaic.version = 11 : i64} {
  func.func @mingru_model_kernel(%arg0: i32, %arg1: memref<16x32xf32, #tpu.memory_space<vmem>>, %arg2: memref<32x64xf32, #tpu.memory_space<vmem>>, %arg3: memref<1x32xf32, #tpu.memory_space<vmem>>, %arg4: memref<1x1xf32, #tpu.memory_space<vmem>>, %arg5: memref<2x1xf32, #tpu.memory_space<vmem>>) attributes {dimension_semantics = [#tpu.dimension_semantics<parallel>], iteration_bounds = array<i64: 1>, scalar_prefetch = 0 : i64, scratch_operands = 0 : i64, tpu.core_type = #tpu.core_type<tc>, window_params = [{transform_indices = @transform_0, window_bounds = array<i64: 16, 32>}, {pipeline_mode = #tpu.pipeline_mode<synchronous>, transform_indices = @transform_1, window_bounds = array<i64: 32, 64>}, {pipeline_mode = #tpu.pipeline_mode<synchronous>, transform_indices = @transform_2, window_bounds = array<i64: 1, 32>}, {pipeline_mode = #tpu.pipeline_mode<synchronous>, transform_indices = @transform_3, window_bounds = array<i64: 1, 1>}, {transform_indices = @transform_4, window_bounds = array<i64: 2, 1>}]} {
    %c0 = arith.constant 0 : index
    %c0_0 = arith.constant 0 : index
    %0 = vector.load %arg1[%c0, %c0_0] : memref<16x32xf32, #tpu.memory_space<vmem>>, vector<16x32xf32>
    %c0_1 = arith.constant 0 : index
    %c0_2 = arith.constant 0 : index
    %1 = vector.load %arg2[%c0_1, %c0_2] : memref<32x64xf32, #tpu.memory_space<vmem>>, vector<32x64xf32>
    %cst = arith.constant dense<0.000000e+00> : vector<16x64xf32>
    %2 = tpu.matmul %0, %1, %cst {dimension_numbers = #tpu.dot_dimension_numbers<[1], [0], [0], [1], [0, 0, 1, 1], [], []>} : vector<16x32xf32>, vector<32x64xf32>, vector<16x64xf32> -> vector<16x64xf32>
    %3 = vector.extract_strided_slice %2 {offsets = [0, 0], sizes = [16, 32], strides = [1, 1]} : vector<16x64xf32> to vector<16x32xf32>
    %4 = vector.extract_strided_slice %2 {offsets = [0, 32], sizes = [16, 32], strides = [1, 1]} : vector<16x64xf32> to vector<16x32xf32>
    %5 = math.absf %4 : vector<16x32xf32>
    %cst_3 = arith.constant 0.000000e+00 : f32
    %6 = vector.broadcast %cst_3 : f32 to vector<16x32xf32>
    %7 = arith.subf %6, %5 : vector<16x32xf32>
    %8 = math.exp %7 : vector<16x32xf32>
    %9 = math.log1p %8 : vector<16x32xf32>
    %cst_4 = arith.constant 0.000000e+00 : f32
    %10 = vector.broadcast %cst_4 : f32 to vector<16x32xf32>
    %11 = arith.maximumf %4, %10 : vector<16x32xf32>
    %12 = arith.addf %11, %9 : vector<16x32xf32>
    %cst_5 = arith.constant 0.000000e+00 : f32
    %13 = vector.broadcast %cst_5 : f32 to vector<16x32xf32>
    %14 = arith.subf %13, %4 : vector<16x32xf32>
    %cst_6 = arith.constant 0.000000e+00 : f32
    %15 = vector.broadcast %cst_6 : f32 to vector<16x32xf32>
    %16 = arith.maximumf %14, %15 : vector<16x32xf32>
    %17 = arith.addf %16, %9 : vector<16x32xf32>
    %cst_7 = arith.constant 0.000000e+00 : f32
    %18 = vector.broadcast %cst_7 : f32 to vector<16x32xf32>
    %19 = arith.subf %18, %12 : vector<16x32xf32>
    %cst_8 = arith.constant 0.000000e+00 : f32
    %20 = vector.broadcast %cst_8 : f32 to vector<16x32xf32>
    %21 = arith.subf %20, %17 : vector<16x32xf32>
    %cst_9 = arith.constant 0.000000e+00 : f32
    %22 = vector.broadcast %cst_9 : f32 to vector<16x32xf32>
    %23 = arith.subf %22, %3 : vector<16x32xf32>
    %cst_10 = arith.constant 0.000000e+00 : f32
    %24 = vector.broadcast %cst_10 : f32 to vector<16x32xf32>
    %25 = arith.maximumf %23, %24 : vector<16x32xf32>
    %26 = math.absf %3 : vector<16x32xf32>
    %cst_11 = arith.constant 0.000000e+00 : f32
    %27 = vector.broadcast %cst_11 : f32 to vector<16x32xf32>
    %28 = arith.subf %27, %26 : vector<16x32xf32>
    %29 = math.exp %28 : vector<16x32xf32>
    %30 = math.log1p %29 : vector<16x32xf32>
    %31 = arith.addf %25, %30 : vector<16x32xf32>
    %cst_12 = arith.constant 0.000000e+00 : f32
    %32 = vector.broadcast %cst_12 : f32 to vector<16x32xf32>
    %33 = arith.cmpf oge, %3, %32 : vector<16x32xf32>
    %cst_13 = arith.constant 0.000000e+00 : f32
    %34 = vector.broadcast %cst_13 : f32 to vector<16x32xf32>
    %35 = arith.maximumf %3, %34 : vector<16x32xf32>
    %cst_14 = arith.constant 5.000000e-01 : f32
    %36 = vector.broadcast %cst_14 : f32 to vector<16x32xf32>
    %37 = arith.addf %35, %36 : vector<16x32xf32>
    %38 = math.log %37 : vector<16x32xf32>
    %cst_15 = arith.constant 0.000000e+00 : f32
    %39 = vector.broadcast %cst_15 : f32 to vector<16x32xf32>
    %40 = arith.subf %39, %31 : vector<16x32xf32>
    %41 = arith.select %33, %38, %40 : vector<16x32xi1>, vector<16x32xf32>
    %42 = arith.addf %21, %41 : vector<16x32xf32>
    %43 = tpu.iota {dimensions = array<i32: 1>} : vector<2x8x32xi32>
    %44 = vector.shape_cast %43 : vector<2x8x32xi32> to vector<16x32xi32>
    %c1_i32 = arith.constant 1 : i32
    %45 = tpu.dynamic_rotate %19 by %c1_i32 dim 0 : vector<16x32xf32>, i32 -> vector<16x32xf32>
    %c1_i32_16 = arith.constant 1 : i32
    %46 = vector.broadcast %c1_i32_16 : i32 to vector<16x32xi32>
    %47 = arith.cmpi sge, %44, %46 : vector<16x32xi32>
    %cst_17 = arith.constant 0.000000e+00 : f32
    %48 = vector.broadcast %cst_17 : f32 to vector<16x32xf32>
    %49 = arith.select %47, %45, %48 : vector<16x32xi1>, vector<16x32xf32>
    %50 = arith.addf %19, %49 : vector<16x32xf32>
    %c2_i32 = arith.constant 2 : i32
    %51 = tpu.dynamic_rotate %50 by %c2_i32 dim 0 : vector<16x32xf32>, i32 -> vector<16x32xf32>
    %c2_i32_18 = arith.constant 2 : i32
    %52 = vector.broadcast %c2_i32_18 : i32 to vector<16x32xi32>
    %53 = arith.cmpi sge, %44, %52 : vector<16x32xi32>
    %cst_19 = arith.constant 0.000000e+00 : f32
    %54 = vector.broadcast %cst_19 : f32 to vector<16x32xf32>
    %55 = arith.select %53, %51, %54 : vector<16x32xi1>, vector<16x32xf32>
    %56 = arith.addf %50, %55 : vector<16x32xf32>
    %c4_i32 = arith.constant 4 : i32
    %57 = tpu.dynamic_rotate %56 by %c4_i32 dim 0 : vector<16x32xf32>, i32 -> vector<16x32xf32>
    %c4_i32_20 = arith.constant 4 : i32
    %58 = vector.broadcast %c4_i32_20 : i32 to vector<16x32xi32>
    %59 = arith.cmpi sge, %44, %58 : vector<16x32xi32>
    %cst_21 = arith.constant 0.000000e+00 : f32
    %60 = vector.broadcast %cst_21 : f32 to vector<16x32xf32>
    %61 = arith.select %59, %57, %60 : vector<16x32xi1>, vector<16x32xf32>
    %62 = arith.addf %56, %61 : vector<16x32xf32>
    %63 = arith.subf %42, %62 : vector<16x32xf32>
    %64 = vector.shape_cast %63 : vector<16x32xf32> to vector<2x8x32xf32>
    %65 = vector.shape_cast %62 : vector<16x32xf32> to vector<2x8x32xf32>
    %cst_22 = arith.constant dense<0xFF800000> : vector<2x32xf32>
    %66 = vector.multi_reduction <maximumf>, %64, %cst_22 [1] : vector<2x8x32xf32> to vector<2x32xf32>
    %67 = vector.shape_cast %66 : vector<2x32xf32> to vector<2x1x32xf32>
    %68 = vector.broadcast %67 : vector<2x1x32xf32> to vector<2x8x32xf32>
    %69 = arith.subf %64, %68 : vector<2x8x32xf32>
    %70 = math.exp %69 : vector<2x8x32xf32>
    %cst_23 = arith.constant dense<0.000000e+00> : vector<2x32xf32>
    %71 = vector.multi_reduction <add>, %70, %cst_23 [1] : vector<2x8x32xf32> to vector<2x32xf32>
    %72 = vector.shape_cast %71 : vector<2x32xf32> to vector<2x1x32xf32>
    %73 = vector.extract_strided_slice %65 {offsets = [0, 7, 0], sizes = [2, 1, 32], strides = [1, 1, 1]} : vector<2x8x32xf32> to vector<2x1x32xf32>
    %74 = arith.addf %73, %67 : vector<2x1x32xf32>
    %75 = math.exp %74 : vector<2x1x32xf32>
    %76 = arith.mulf %75, %72 : vector<2x1x32xf32>
    %77 = vector.shape_cast %76 : vector<2x1x32xf32> to vector<2x32xf32>
    %c0_24 = arith.constant 0 : index
    %c0_25 = arith.constant 0 : index
    %78 = vector.load %arg3[%c0_24, %c0_25] : memref<1x32xf32, #tpu.memory_space<vmem>>, vector<1x32xf32>
    %79 = vector.broadcast %78 : vector<1x32xf32> to vector<2x32xf32>
    %80 = arith.mulf %77, %79 : vector<2x32xf32>
    %cst_26 = arith.constant dense<0.000000e+00> : vector<2xf32>
    %81 = vector.multi_reduction <add>, %80, %cst_26 [1] : vector<2x32xf32> to vector<2xf32>
    %82 = vector.shape_cast %81 : vector<2xf32> to vector<2x1xf32>
    %c0_27 = arith.constant 0 : index
    %c0_28 = arith.constant 0 : index
    %83 = vector.load %arg4[%c0_27, %c0_28] : memref<1x1xf32, #tpu.memory_space<vmem>>, vector<1x1xf32>
    %84 = vector.broadcast %83 : vector<1x1xf32> to vector<2x1xf32>
    %85 = arith.addf %82, %84 : vector<2x1xf32>
    %c0_29 = arith.constant 0 : index
    %c0_30 = arith.constant 0 : index
    %86 = vector.load %arg5[%c0_29, %c0_30] : memref<2x1xf32, #tpu.memory_space<vmem>>, vector<2x1xf32>
    tpu.vector_store %arg5[%c0_29, %c0_30], %85 {strides = array<i32>} : memref<2x1xf32, #tpu.memory_space<vmem>>, vector<2x1xf32>,
    return
  }
  func.func @transform_0(%arg0: i32) -> (i32, i32) {
    %c0_i32 = arith.constant 0 : i32
    %c0_i32_0 = arith.constant 0 : i32
    return %arg0, %c0_i32 : i32, i32
  }
  func.func @transform_1(%arg0: i32) -> (i32, i32) {
    %c0_i32 = arith.constant 0 : i32
    %c0_i32_0 = arith.constant 0 : i32
    %c0_i32_1 = arith.constant 0 : i32
    return %c0_i32, %c0_i32_0 : i32, i32
  }
  func.func @transform_2(%arg0: i32) -> (i32, i32) {
    %c0_i32 = arith.constant 0 : i32
    %c0_i32_0 = arith.constant 0 : i32
    %c0_i32_1 = arith.constant 0 : i32
    return %c0_i32, %c0_i32_0 : i32, i32
  }
  func.func @transform_3(%arg0: i32) -> (i32, i32) {
    %c0_i32 = arith.constant 0 : i32
    %c0_i32_0 = arith.constant 0 : i32
    %c0_i32_1 = arith.constant 0 : i32
    return %c0_i32, %c0_i32_0 : i32, i32
  }
  func.func @transform_4(%arg0: i32) -> (i32, i32) {
    %c0_i32 = arith.constant 0 : i32
    %c0_i32_0 = arith.constant 0 : i32
    return %arg0, %c0_i32 : i32, i32
  }
}

</mosaic_0001>

<bundles_post_ra>
// kernel: tpu_custom_call.1
= control target key start
LH: loop header
LB: loop body
LE: loop exit
PB: predicated region body
PF: predicated region fallthrough
CT: control target
= control target key end

     0   :  { %s572_s0 = inlined_call_operand.hbm [shape: f32[16,32], index: 0, kind: input, shape index: {}]   ;;  %s573_s1 = inlined_call_operand.hbm [shape: f32[32,64], index: 1, kind: input, shape index: {}]   ;;  %s574_s2 = inlined_call_operand.vmem [shape: f32[1,32], index: 2, kind: input, shape index: {}]   ;;  %s575_s3 = inlined_call_operand.<no memory space> [shape: f32[1,1], index: 3, kind: input, shape index: {}]   ;;  %s576_s4 = inlined_call_operand.vmem [shape: f32[2,1], index: 4, kind: output, shape index: {}]  }
   0x1   :  { %v9_v0 = vstv %s575_s3 }
   0x2   :  { %10 = vst [vmem:[#allocation2] sm:$0x1] %v9_v0 }
   0x3   :  { %11 = vsyncpa [#allocation4], 0 }
   0x4   :  { %12 = vsyncpa [#allocation6], 0  ;;  %s470_s17 = smov [#allocation3]   ;;  %s422_s21 = scalar_lea.hbm %s572_s0, 256 }
   0x5   :  { %s18_s18 = sshll.u32 %s470_s17, 4  ;;  %p423_p0 = scmp.ne.s32.totalorder %s572_s0, %s422_s21  ;;  %s19_s18 = int_to_ptr.vmem [resolvable:$true] %s18_s18 }
   0x6   :  { %p426_p1 = scmp.lt.u32.totalorder %s422_s21, %s572_s0 }
   0x8   :  { %p428_p2 = pnand %p426_p1, %p423_p0 }
   0xa   :  { %431 = shalt.err (!%p428_p2)
}
   0xb   :  { %s432_s3 = scalar_lea.vmem %s19_s18, 256  ;;  %p437_p4 = scmp.lt.s32.totalorder %s19_s18, %s19_s18 }
   0xc   :  { %p433_p3 = scmp.ne.s32.totalorder %s19_s18, %s432_s3  ;;  %p438_p5 = scmp.lt.s32.totalorder %s432_s3, %s432_s3 }
   0xe   :  { %p439_p6 = por %p438_p5, %p437_p4 }
  0x10   :  { %p440_p7 = pnand %p439_p6, %p433_p3 }
  0x12   :  { %443 = shalt.err (!%p440_p7)
}
  0x13   :  { %s471_s26 = smov 128   ;;  %s472_s27 = smov 8  }
  0x14   :  { %24 = dma.hbm_to_vmem [thread:$0]  %s572_s0, 256, %s19_s18, [#allocation4], %s471_s26, %s471_s26, %s472_s27  }
  0x15   :  { %s473_s30 = smov [#allocation5]   ;;  %s444_s8 = scalar_lea.hbm %s573_s1, 512 }
  0x16   :  { %s30_s5 = sshll.u32 %s473_s30, 4  ;;  %p445_p8 = scmp.ne.s32.totalorder %s573_s1, %s444_s8  ;;  %s31_s5 = int_to_ptr.vmem [resolvable:$true] %s30_s5 }
  0x17   :  { %p448_p9 = scmp.lt.u32.totalorder %s444_s8, %s573_s1 }
  0x19   :  { %p450_p10 = pnand %p448_p9, %p445_p8 }
  0x1b   :  { %453 = shalt.err (!%p450_p10)
}
  0x1c   :  { %s454_s13 = scalar_lea.vmem %s31_s5, 512  ;;  %p459_p12 = scmp.lt.s32.totalorder %s31_s5, %s31_s5 }
  0x1d   :  { %p455_p11 = scmp.ne.s32.totalorder %s31_s5, %s454_s13  ;;  %p460_p13 = scmp.lt.s32.totalorder %s454_s13, %s454_s13 }
  0x1f   :  { %p461_p0 = por %p460_p13, %p459_p12 }
  0x21   :  { %p462_p1 = pnand %p461_p0, %p455_p11 }
  0x23   :  { %465 = shalt.err (!%p462_p1)
}
  0x24   :  { %36 = dma.hbm_to_vmem [thread:$0]  %s573_s1, 512, %s31_s5, [#allocation6], %s471_s26, %s471_s26, %s472_s27  }
  0x25   :  { %466 = dma.done.wait [#allocation4], 256  }
  0x26   :  { %467 = vsyncadd [#allocation4], 4294967040 }
  0x27   :  { %468 = dma.done.wait [#allocation6], 512  }
  0x28   :  { %469 = vsyncadd [#allocation6], 4294966784  ;;  %vm53_vm0 = vcmask 261120   ;;  %v49_v1 = vld [vmem:[#allocation5] sm:$0xff]  ;;  %v50_v2 = vld [vmem:[#allocation5 + $0x8] sm:$0xff]  ;;  %s474_s1 = smov 96   ;;  %v195_v57 = vlaneseq }
  0x29   :  { %v51_v3 = vld [vmem:[#allocation5 + $0x10] sm:$0xff]  ;;  %v388_v4 = vpack.c.bf16 %v50_v2, %v49_v1  ;;  %v52_v5 = vld [vmem:[#allocation5 + $0x18] sm:$0xff]  ;;  %s475_s15 = smov 32   ;;  %vm277_vm11 = vcmask 523520   ;;  %vm344_vm12 = vcmask 253952   ;;  %vm340_vm13 = vcmask 261127  }
  0x2a   :  { %v47_v6 = vld [vmem:[#allocation3] sm:$0xff]  ;;  %v392_v7 = vpack.c.bf16 %v52_v5, %v51_v3  ;;  %v48_v8 = vld [vmem:[#allocation3 + $0x8] sm:$0xff]  ;;  %v196_v59 = vshrl.u32 %v195_v57, 7  ;;  %vm359_vm14 = vcmask 0   ;;  %vm357_vm15 = vcmask 7175  }
  0x2b   :  { %385 = vmatprep.mubr.msk.f32.mxu0 %vm53_vm0, %v47_v6  ;;  %389 = vmatprep.subr.bf16.mxu0 %v388_v4 }
  0x2c   :  { %391 = vmatpush3.bf16.msra.mxu0 %v388_v4  ;;  %vm207_vm5 = vcmp.lt.s32.totalorder %v196_v59, 1  ;;  %vm210_vm6 = vcmp.ge.s32.totalorder %v196_v59, 1  ;;  %vm233_vm7 = vcmp.lt.s32.totalorder %v196_v59, 2  ;;  %vm236_vm8 = vcmp.ge.s32.totalorder %v196_v59, 2 }
  0x2d   :  { %393 = vmatprep.subr.bf16.mxu0 %v392_v7  ;;  %vm259_vm9 = vcmp.lt.s32.totalorder %v196_v59, 4  ;;  %vm262_vm10 = vcmp.ge.s32.totalorder %v196_v59, 4 }
  0x30   :  { %395 = vmatpush3.bf16.msra.mxu0 %v392_v7 }
  0x33   :  { %386 = vmatmul.mubr.msk.f32.vlgmr.msra.gmra.mrb[0].mxu0 %vm53_vm0, %v48_v8 }
 0x106   :  { %v387_v9 = vpop.f32.mrb[0].mxu0 }
 0x107   :  { %v136_v10 = vand.u32 2147483647, %v387_v9  ;;  %v126_v11 = vpop.f32.mrb[1].mxu0  ;;  %v162_v17 = vmax.f32 %v387_v9, 0.0  ;;  %v166_v28 = vsub.f32 0.0, %v387_v9  ;;  %vm176_vm3 = vcmp.ge.f32.partialorder %v387_v9, 0.0 }
 0x108   :  { %v135_v12 = vand.u32 2147483647, %v126_v11  ;;  %v161_v18 = vmax.f32 %v126_v11, 0.0  ;;  %v165_v31 = vsub.f32 0.0, %v126_v11  ;;  %vm175_vm4 = vcmp.ge.f32.partialorder %v126_v11, 0.0 }
 0x109   :  { %v138_v13 = vsub.f32 0.0, %v136_v10  ;;  %v178_v22 = vadd.f32 0.5, %v162_v17  ;;  %v168_v37 = vmax.f32 %v166_v28, 0.0 }
 0x10a   :  { %v137_v14 = vsub.f32 0.0, %v135_v12  ;;  %v177_v24 = vadd.f32 0.5, %v161_v18  ;;  %v167_v41 = vmax.f32 %v165_v31, 0.0 }
 0x10b   :  { %v141_v15 = vmul.f32 1.442695, %v138_v13 }
 0x10c   :  { %v139_v16 = vmul.f32 1.442695, %v137_v14 }
 0x10d   :  { %402 = vpow2.f32 %v141_v15 }
 0x10e   :  { %404 = vpow2.f32 %v139_v16 }
 0x117   :  { %v403_v19 = vpop.eup %402 }
 0x118   :  { %v405_v20 = vpop.eup %404  ;;  %v152_v21 = vadd.f32 1.0, %v403_v19  ;;  %v155_v25 = vmul.f32 -0.5, %v403_v19  ;;  %v158_v30 = vand.u32 2147483647, %v403_v19 }
 0x119   :  { %v143_v23 = vadd.f32 1.0, %v405_v20  ;;  %v146_v26 = vmul.f32 -0.5, %v405_v20  ;;  %v149_v32 = vand.u32 2147483647, %v405_v20 }
 0x11a   :  { %406 = vlog2.f32 %v152_v21  ;;  %v156_v27 = vadd.f32 1.0, %v155_v25  ;;  %vm159_vm1 = vcmp.lt.f32.partialorder %v158_v30, 0.0004427343 }
 0x11b   :  { %408 = vlog2.f32 %v143_v23  ;;  %v147_v29 = vadd.f32 1.0, %v146_v26  ;;  %vm150_vm2 = vcmp.lt.f32.partialorder %v149_v32, 0.0004427343 }
 0x11c   :  { %410 = vlog2.f32 %v178_v22  ;;  %v157_v36 = vmul.f32 %v403_v19, %v156_v27  ;;  %v369_v19 = vld [vmem:[%s574_s2] ss:$0 sm:$0xff] }
 0x11d   :  { %412 = vlog2.f32 %v177_v24  ;;  %v148_v39 = vmul.f32 %v405_v20, %v147_v29 }
 0x124   :  { %v407_v33 = vpop.eup %406 }
 0x125   :  { %v409_v34 = vpop.eup %408  ;;  %v154_v35 = vmul.f32 0.6931472, %v407_v33 }
 0x126   :  { %v145_v38 = vmul.f32 0.6931472, %v409_v34  ;;  %v411_v40 = vpop.eup %410 }
 0x127   :  { %v160_v42 = vsel %vm159_vm1, %v157_v36, %v154_v35  ;;  %v413_v43 = vpop.eup %412  ;;  %v182_v49 = vmul.f32 0.6931472, %v411_v40 }
 0x128   :  { %v151_v44 = vsel %vm150_vm2, %v148_v39, %v145_v38  ;;  %v528_v45 = vadd.f32 %v168_v37, %v160_v42  ;;  %v164_v52 = vadd.f32 %v162_v17, %v160_v42  ;;  %v180_v53 = vmul.f32 0.6931472, %v413_v43 }
 0x129   :  { %v163_v46 = vadd.f32 %v161_v18, %v151_v44  ;;  %v530_v47 = vadd.f32 %v167_v41, %v151_v44 }
 0x12a   :  { %v174_v48 = vsub.f32 0.0, %v528_v45  ;;  %v172_v56 = vsub.f32 0.0, %v164_v52 }
 0x12b   :  { %v171_v50 = vsub.f32 0.0, %v163_v46  ;;  %v173_v51 = vsub.f32 0.0, %v530_v47 }
 0x12c   :  { %v184_v54 = vsel %vm176_vm3, %v182_v49, %v174_v48 }
 0x12d   :  { %199 = vrot.lane.b32.xlu0 %v171_v50, %s474_s1  ;;  %v183_v55 = vsel %vm175_vm4, %v180_v53, %v173_v51 }
 0x131   :  { %201 = vrot.lane.b32.xlu0 %v172_v56, %s474_s1 }
 0x19f   :  { %v200_v58 = vpop.permute.xlu0 %199 }
 0x1a0   :  { %v205_v61 = vrot.slane %v200_v58, 7 }
 0x1a3   :  { %v202_v60 = vpop.permute.xlu0 %201 }
 0x1a4   :  { %v206_v62 = vrot.slane %v202_v60, 7 }
 0x1a6   :  { %v209_v63 = vsel %vm207_vm5, %v206_v62, %v205_v61  ;;  %v208_v1 = vsel %vm207_vm5, %v205_v61, %v206_v62 }
 0x1a7   :  { %v211_v0 = vsel %vm210_vm6, %v209_v63, 0.0  ;;  %v212_v2 = vsel %vm210_vm6, %v208_v1, 0.0 }
 0x1a8   :  { %215 = vrot.lane.b32.xlu1 %v211_v0, %s475_s15 }
 0x1ac   :  { %217 = vrot.lane.b32.xlu1 %v212_v2, %s475_s15 }
 0x21a   :  { %v216_v3 = vpop.permute.xlu1 %215 }
 0x21b   :  { %v221_v4 = vadd.f32 %v216_v3, %v171_v50 }
 0x21d   :  { %225 = vrot.lane.b32.xlu0 %v221_v4, %s474_s1 }
 0x21e   :  { %v218_v5 = vpop.permute.xlu1 %217 }
 0x21f   :  { %v222_v6 = vadd.f32 %v218_v5, %v172_v56 }
 0x221   :  { %227 = vrot.lane.b32.xlu1 %v222_v6, %s474_s1 }
 0x28f   :  { %v226_v7 = vpop.permute.xlu0 %225 }
 0x290   :  { %v231_v9 = vrot.slane %v226_v7, 6 }
 0x293   :  { %v228_v8 = vpop.permute.xlu1 %227 }
 0x294   :  { %v232_v10 = vrot.slane %v228_v8, 6 }
 0x296   :  { %v235_v11 = vsel %vm233_vm7, %v232_v10, %v231_v9  ;;  %v234_v12 = vsel %vm233_vm7, %v231_v9, %v232_v10 }
 0x297   :  { %v237_v13 = vsel %vm236_vm8, %v235_v11, 0.0  ;;  %v238_v14 = vsel %vm236_vm8, %v234_v12, 0.0 }
 0x298   :  { %241 = vrot.lane.b32.xlu0 %v237_v13, %s475_s15  ;;  %243 = vrot.lane.b32.xlu1 %v238_v14, %s475_s15 }
 0x30a   :  { %v242_v15 = vpop.permute.xlu0 %241  ;;  %v244_v16 = vpop.permute.xlu1 %243 }
 0x30b   :  { %v247_v17 = vadd.f32 %v242_v15, %v221_v4  ;;  %v248_v18 = vadd.f32 %v244_v16, %v222_v6 }
 0x30d   :  { %251 = vrot.lane.b32.xlu0 %v247_v17, %s474_s1  ;;  %253 = vrot.lane.b32.xlu1 %v248_v18, %s474_s1 }
 0x311   :  { %189 = vrot.lane.b32.xlu0 %v184_v54, %s475_s15 }
 0x315   :  { %187 = vrot.lane.b32.xlu0 %v183_v55, %s475_s15 }
 0x319   :  { %326 = vrot.lane.b32.xlu0 %v369_v19, %s475_s15 }
 0x37f   :  { %v252_v20 = vpop.permute.xlu0 %251  ;;  %v254_v21 = vpop.permute.xlu1 %253 }
 0x380   :  { %v257_v22 = vrot.slane %v252_v20, 4  ;;  %v258_v23 = vrot.slane %v254_v21, 4 }
 0x382   :  { %v260_v24 = vsel %vm259_vm9, %v257_v22, %v258_v23  ;;  %v261_v26 = vsel %vm259_vm9, %v258_v23, %v257_v22 }
 0x383   :  { %v264_v25 = vsel %vm262_vm10, %v260_v24, 0.0  ;;  %v263_v27 = vsel %vm262_vm10, %v261_v26, 0.0  ;;  %v190_v28 = vpop.permute.xlu0 %189  ;;  %v370_v24 = vld [vmem:[#allocation2] ss:$0 sm:$0xff] }
 0x384   :  { %269 = vrot.lane.b32.xlu1 %v264_v25, %s475_s15  ;;  %v194_v30 = vadd.f32 %v190_v28, %v174_v48 }
 0x387   :  { %v188_v32 = vpop.permute.xlu0 %187 }
 0x388   :  { %267 = vrot.lane.b32.xlu1 %v263_v27, %s475_s15  ;;  %v193_v35 = vadd.f32 %v188_v32, %v173_v51 }
 0x38b   :  { %v327_v11 = vpop.permute.xlu0 %326 }
 0x3f6   :  { %v270_v29 = vpop.permute.xlu1 %269 }
 0x3f7   :  { %v274_v31 = vadd.f32 %v270_v29, %v248_v18 }
 0x3f9   :  { %v276_v33 = vsub.f32 %v194_v30, %v274_v31 }
 0x3fa   :  { %v268_v34 = vpop.permute.xlu1 %267 }
 0x3fb   :  { %v285_v36 = vsel %vm277_vm11, %v276_v33, -inf  ;;  %v273_v37 = vadd.f32 %v268_v34, %v247_v17 }
 0x3fc   :  { %v286_v38 = vrot.slane %v285_v36, 4 }
 0x3fd   :  { %v275_v39 = vsub.f32 %v193_v35, %v273_v37 }
 0x3fe   :  { %v287_v40 = vmax.f32 %v285_v36, %v286_v38 }
 0x3ff   :  { %v278_v41 = vsel %vm277_vm11, %v275_v39, -inf }
 0x400   :  { %v288_v42 = vrot.slane %v287_v40, 2  ;;  %v279_v43 = vrot.slane %v278_v41, 4 }
 0x402   :  { %v289_v44 = vmax.f32 %v287_v40, %v288_v42  ;;  %v280_v45 = vmax.f32 %v278_v41, %v279_v43 }
 0x404   :  { %v290_v46 = vrot.slane %v289_v44, 1  ;;  %v281_v48 = vrot.slane %v280_v45, 2 }
 0x406   :  { %v291_v49 = vmax.f32 %v289_v44, %v290_v46  ;;  %v282_v50 = vmax.f32 %v280_v45, %v281_v48 }
 0x408   :  { %v293_v52 = vsub.f32 %v276_v33, %v291_v49  ;;  %v283_v53 = vrot.slane %v282_v50, 1  ;;  %v313_v56 = vadd.f32 %v291_v49, %v274_v31 }
 0x40a   :  { %v296_v47 = vmul.f32 1.442695, %v293_v52  ;;  %v284_v51 = vmax.f32 %v282_v50, %v283_v53  ;;  %v316_v57 = vmul.f32 1.442695, %v313_v56 }
 0x40c   :  { %414 = vpow2.f32 %v296_v47  ;;  %v292_v54 = vsub.f32 %v275_v39, %v284_v51  ;;  %v312_v58 = vadd.f32 %v284_v51, %v273_v37 }
 0x40e   :  { %v294_v55 = vmul.f32 1.442695, %v292_v54  ;;  %v314_v62 = vmul.f32 1.442695, %v312_v58 }
 0x410   :  { %416 = vpow2.f32 %v294_v55 }
 0x411   :  { %418 = vpow2.f32 %v316_v57 }
 0x412   :  { %420 = vpow2.f32 %v314_v62 }
 0x416   :  { %v415_v59 = vpop.eup %414 }
 0x417   :  { %v305_v60 = vsel %vm277_vm11, %v415_v59, 0.0 }
 0x418   :  { %v306_v61 = vrot.slane %v305_v60, 4 }
 0x41a   :  { %v417_v63 = vpop.eup %416  ;;  %v307_v0 = vadd.f32 %v306_v61, %v305_v60 }
 0x41b   :  { %v298_v1 = vsel %vm277_vm11, %v417_v63, 0.0  ;;  %v419_v10 = vpop.eup %418 }
 0x41c   :  { %v299_v2 = vrot.slane %v298_v1, 4  ;;  %v308_v3 = vrot.slane %v307_v0, 2  ;;  %v421_v16 = vpop.eup %420 }
 0x41e   :  { %v300_v4 = vadd.f32 %v299_v2, %v298_v1  ;;  %v309_v5 = vadd.f32 %v308_v3, %v307_v0 }
 0x420   :  { %v301_v6 = vrot.slane %v300_v4, 2  ;;  %v310_v7 = vrot.slane %v309_v5, 1 }
 0x422   :  { %v302_v8 = vadd.f32 %v301_v6, %v300_v4  ;;  %v311_v9 = vadd.f32 %v310_v7, %v309_v5 }
 0x424   :  { %v303_v12 = vrot.slane %v302_v8, 1  ;;  %v319_v13 = vmul.f32 %v419_v10, %v311_v9 }
 0x426   :  { %v304_v14 = vadd.f32 %v303_v12, %v302_v8  ;;  %v330_v15 = vmul.f32 %v327_v11, %v319_v13 }
 0x428   :  { %v318_v17 = vmul.f32 %v421_v16, %v304_v14  ;;  %v333_v18 = vrot.slane %v330_v15, 7 }
 0x42a   :  { %v329_v19 = vmul.f32 %v327_v11, %v318_v17  ;;  %336 = vrot.lane.b32.xlu0 %v333_v18, %s474_s1 }
 0x42c   :  { %334 = vrot.lane.b32.xlu1 %v329_v19, %s474_s1 }
 0x49c   :  { %v337_v20 = vpop.permute.xlu0 %336 }
 0x49d   :  { %v345_v21 = vsel %vm344_vm12, %v337_v20, 0.0 }
 0x49e   :  { %346 = vadd.xlane.f32.xlu0 %v345_v21  ;;  %v335_v22 = vpop.permute.xlu1 %334 }
 0x49f   :  { %v341_v23 = vsel %vm340_vm13, %v335_v22, 0.0 }
 0x4a0   :  { %342 = vadd.xlane.f32.xlu1 %v341_v23 }
 0x52b   :  { %v347_v25 = vpop.xlane.xlu0 %346 }
 0x52c   :  { %v356_v26 = vadd.f32 %v370_v24, %v347_v25 }
 0x52d   :  { %v343_v27 = vpop.xlane.xlu1 %342 }
 0x52e   :  { %360 = vst.msk [vmem:[%s576_s4 + $0x1] sm:$0x1] %vm359_vm14, %v356_v26  ;;  %v355_v28 = vadd.f32 %v370_v24, %v343_v27 }
 0x530   :  { %358 = vst.msk [vmem:[%s576_s4 - $0x7] sm:$0x80] %vm357_vm15, %v355_v28 }
 0x531   :  { %365 = vsyncpa [#allocation4], 1 }
 0x532   :  { %366 = vsyncpa [#allocation6], 1 }

</bundles_post_ra>
